<compile_context>
chip_gen: v7x
topology: tpu7x:2x2x1
jax: 0.10.0
libtpu: 0.0.40
codegen_flags: <defaults>
</compile_context>

<pallas_src>
import functools

import jax
import jax.numpy as jnp
from jax import lax
from jax.experimental import pallas as pl
from jax.experimental.pallas import tpu as pltpu


def _round_up(x, m):
    return (x + m - 1) // m * m


def _largest_divisor_leq(n, cap):
    t = max(1, min(n, cap))
    while n % t != 0:
        t -= 1
    return t


# ------------------- Fused QKV projection + flash attention kernel -------------------
def _fused_head_kernel(xq_ref, xkv_ref, wq_ref, wkv_ref, o_ref,
                       q_sc, m_sc, l_sc, acc_sc, *, use_bf16):
    ki = pl.program_id(2)
    hp = o_ref.shape[-1]

    # --- init per q-tile: project q once, reset online-softmax state ---------------
    @pl.when(ki == 0)
    def _():
        xq = xq_ref[...]                       # (tq, C)
        wq = wq_ref[...]                       # (C, Hp), 1/sqrt(C) already folded in
        if use_bf16:
            xq = xq.astype(jnp.bfloat16)
            wq = wq.astype(jnp.bfloat16)
        q = jnp.dot(xq, wq, preferred_element_type=jnp.float32)
        q_sc[...] = q.astype(q_sc.dtype)
        m_sc[...] = jnp.full_like(m_sc[...], -jnp.inf)
        l_sc[...] = jnp.zeros_like(l_sc[...])
        acc_sc[...] = jnp.zeros_like(acc_sc[...])

    # --- project k|v for this kv-tile in one wide matmul ---------------------------
    xkv = xkv_ref[...]                         # (tk, C)
    wkv = wkv_ref[...]                         # (C, 2*Hp)  [k | v]
    if use_bf16:
        xkv = xkv.astype(jnp.bfloat16)
        wkv = wkv.astype(jnp.bfloat16)
    kv = jnp.dot(xkv, wkv, preferred_element_type=jnp.float32)   # (tk, 2*Hp)
    k = kv[:, :hp]                             # lane-aligned slices (Hp % 128 == 0)
    v = kv[:, hp:]

    # --- scores: contract last dims directly (no k.T / XLU transpose) --------------
    q = q_sc[...]
    if use_bf16:
        k = k.astype(jnp.bfloat16)
    s = lax.dot_general(q, k, (((1,), (1,)), ((), ())),
                        preferred_element_type=jnp.float32)       # (tq, tk)

    # --- online softmax (state in f32) ---------------------------------------------
    m_prev = m_sc[...]
    m_new = jnp.maximum(m_prev, jnp.max(s, axis=-1, keepdims=True))
    alpha = jnp.exp(m_prev - m_new)
    p = jnp.exp(s - m_new)                      # f32 exp (keep precision; see review)
    l_sc[...] = alpha * l_sc[...] + jnp.sum(p, axis=-1, keepdims=True)

    if use_bf16:
        p_mm = p.astype(jnp.bfloat16)
        v = v.astype(jnp.bfloat16)
    else:
        p_mm = p
    acc_sc[...] = alpha * acc_sc[...] + jnp.dot(
        p_mm, v, preferred_element_type=jnp.float32)
    m_sc[...] = m_new

    # --- finalize: exact reciprocal (once per q-tile, essentially free) ------------
    @pl.when(ki == pl.num_programs(2) - 1)
    def _():
        inv_l = pl.reciprocal(l_sc[...], approx=False)
        o_ref[...] = (acc_sc[...] * inv_l).astype(o_ref.dtype)


# ----------------------------------- Wrapper ------------------------------------------
def head_forward(x, wk, wq, wv, *, tq=None, tk=None, use_bf16_matmul=False):
    """Single-head attention forward matching the PyTorch `Head` module.

    x: (B, T, C) float32; wk/wq/wv: (C, H) float32 (nn.Linear weights stored
    pre-transposed so the kernel computes x @ W).  Returns (B, T, H) float32.

    use_bf16_matmul=True is the recommended setting on TPU v5e (bf16-native MXU);
    on v6e/v7x the inner loop is EUP(exp)-bound so it is optional.
    """
    B, T, C = x.shape
    H = wk.shape[1]
    Hp = _round_up(H, 128)          # lane-dense head dim

    # Tile defaults: tq ~256 bounds the (tq, tk) score intermediate; tk ~512 amortizes
    # per-grid-step overhead on the streamed kv axis.
    tq = tq if tq is not None else _largest_divisor_leq(T, 256)
    tk = tk if tk is not None else _largest_divisor_leq(T, 512)
    # v7x has 2 TensorCores: when B == 1 make sure the parallel grid has >= 2 steps.
    if B == 1 and T // tq < 2 and T > 1:
        tq = _largest_divisor_leq(T, T // 2)
    assert T % tq == 0 and T % tk == 0, "T must be divisible by the chosen tile sizes"

    # Fold the module's C**-0.5 scale (n_embd, NOT head_size -- intentional, matches
    # the original PyTorch code) into Wq; zero-pad head dim to Hp; fuse k|v weights.
    scale = jnp.asarray(C, x.dtype) ** jnp.asarray(-0.5, x.dtype)
    pad = ((0, 0), (0, Hp - H))
    wq_s = jnp.pad(wq * scale, pad)                                       # (C, Hp)
    wkv = jnp.concatenate([jnp.pad(wk, pad), jnp.pad(wv, pad)], axis=1)   # (C, 2*Hp)

    comp_dtype = jnp.bfloat16 if use_bf16_matmul else jnp.float32

    out_p = pl.pallas_call(
        functools.partial(_fused_head_kernel, use_bf16=use_bf16_matmul),
        out_shape=jax.ShapeDtypeStruct((B, T, Hp), x.dtype),
        grid=(B, T // tq, T // tk),
        in_specs=[
            # x, sliced as the q-tile (indexed by qi)
            pl.BlockSpec((pl.Squeezed(), tq, C), lambda b, qi, ki: (b, qi, 0)),
            # x, sliced as the kv-tile (indexed by ki); streamed/double-buffered.
            # (If profiling shows exposed DMA at small tiles, sweep
            #  pipeline_mode=pl.Buffered(3) here.)
            pl.BlockSpec((pl.Squeezed(), tk, C), lambda b, qi, ki: (b, ki, 0)),
            # weights: constant block index -> effectively VMEM-resident across steps
            pl.BlockSpec((C, Hp), lambda b, qi, ki: (0, 0)),
            pl.BlockSpec((C, 2 * Hp), lambda b, qi, ki: (0, 0)),
        ],
        out_specs=pl.BlockSpec((pl.Squeezed(), tq, Hp), lambda b, qi, ki: (b, qi, 0)),
        scratch_shapes=[
            pltpu.VMEM((tq, Hp), comp_dtype),    # q tile, cached across the ki loop
            pltpu.VMEM((tq, 1), jnp.float32),    # running max  m_i
            pltpu.VMEM((tq, 1), jnp.float32),    # running sum  l_i
            pltpu.VMEM((tq, Hp), jnp.float32),   # output accumulator
        ],
        compiler_params=pltpu.CompilerParams(
            dimension_semantics=("parallel", "parallel", "arbitrary"),
            vmem_limit_bytes=32 * 1024 * 1024,
        ),
    )(x, x, wq_s, wkv)

    return out_p[:, :, :H]          # drop zero-padded head columns


def head_reference(x, wk, wq, wv):
    k = x @ wk
    q = x @ wq
    v = x @ wv
    C = x.shape[-1]
    wei = (q @ jnp.swapaxes(k, -2, -1)) * (C ** -0.5)
    wei = jax.nn.softmax(wei, axis=-1)
    return wei @ v


if __name__ == "__main__":
    B, T, C, H = 2, 8, 32, 16   # batch, seq, n_embd, head_size

    key = jax.random.PRNGKey(0)
    kx, kk, kq, kv = jax.random.split(key, 4)
    x = jax.random.normal(kx, (B, T, C), dtype=jnp.float32)
    # nn.Linear(n_embd, head_size) weight has shape (head_size, n_embd);
    # we keep it pre-transposed as (n_embd, head_size) for x @ W.
    wk = jax.random.normal(kk, (C, H), dtype=jnp.float32) * (C ** -0.5)
    wq = jax.random.normal(kq, (C, H), dtype=jnp.float32) * (C ** -0.5)
    wv = jax.random.normal(kv, (C, H), dtype=jnp.float32) * (C ** -0.5)

    out = head_forward(x, wk, wq, wv)
    jax.block_until_ready(out)

    ref = head_reference(x, wk, wq, wv)
    assert out.shape == (B, T, H)
    # f32 matmuls + exact reciprocal -> tight tolerance vs the reference
    assert jnp.allclose(out, ref, atol=1e-5, rtol=1e-5), "mismatch vs reference"

    print("KERNEL_OK")
</pallas_src>

<mosaic_0001>
module attributes {stable_mosaic.version = 11 : i64} {
  func.func @_fused_head_kernel(%arg0: i32, %arg1: i32, %arg2: i32, %arg3: memref<1x8x32xf32, #tpu.memory_space<vmem>>, %arg4: memref<1x8x32xf32, #tpu.memory_space<vmem>>, %arg5: memref<32x128xf32, #tpu.memory_space<vmem>>, %arg6: memref<32x256xf32, #tpu.memory_space<vmem>>, %arg7: memref<1x8x128xf32, #tpu.memory_space<vmem>>, %arg8: memref<8x128xf32, #tpu.memory_space<vmem>>, %arg9: memref<8x1xf32, #tpu.memory_space<vmem>>, %arg10: memref<8x1xf32, #tpu.memory_space<vmem>>, %arg11: memref<8x128xf32, #tpu.memory_space<vmem>>) attributes {dimension_semantics = [#tpu.dimension_semantics<parallel>, #tpu.dimension_semantics<parallel>, #tpu.dimension_semantics<arbitrary>], iteration_bounds = array<i64: 2, 1, 1>, scalar_prefetch = 0 : i64, scratch_operands = 4 : i64, tpu.core_type = #tpu.core_type<tc>, window_params = [{transform_indices = @transform_0, window_bounds = array<i64: 1, 8, 32>}, {transform_indices = @transform_1, window_bounds = array<i64: 1, 8, 32>}, {pipeline_mode = #tpu.pipeline_mode<synchronous>, transform_indices = @transform_2, window_bounds = array<i64: 32, 128>}, {pipeline_mode = #tpu.pipeline_mode<synchronous>, transform_indices = @transform_3, window_bounds = array<i64: 32, 256>}, {transform_indices = @transform_4, window_bounds = array<i64: 1, 8, 128>}]} {
    %c0_i32 = arith.constant 0 : i32
    %0 = arith.cmpi eq, %arg2, %c0_i32 : i32
    %1 = arith.extui %0 : i1 to i32
    %c0_i32_0 = arith.constant 0 : i32
    %2 = arith.cmpi ne, %1, %c0_i32_0 : i32
    scf.if %2 {
      %c0_25 = arith.constant 0 : index
      %c0_26 = arith.constant 0 : index
      %c0_27 = arith.constant 0 : index
      %36 = vector.load %arg3[%c0_25, %c0_26, %c0_27] : memref<1x8x32xf32, #tpu.memory_space<vmem>>, vector<1x8x32xf32>
      %37 = vector.shape_cast %36 : vector<1x8x32xf32> to vector<8x32xf32>
      %c0_28 = arith.constant 0 : index
      %c0_29 = arith.constant 0 : index
      %38 = vector.load %arg5[%c0_28, %c0_29] : memref<32x128xf32, #tpu.memory_space<vmem>>, vector<32x128xf32>
      %cst_30 = arith.constant dense<0.000000e+00> : vector<8x128xf32>
      %39 = tpu.matmul %37, %38, %cst_30 {dimension_numbers = #tpu.dot_dimension_numbers<[1], [0], [0], [1], [0, 0, 1, 1], [], []>} : vector<8x32xf32>, vector<32x128xf32>, vector<8x128xf32> -> vector<8x128xf32>
      %c0_31 = arith.constant 0 : index
      %c0_32 = arith.constant 0 : index
      %40 = vector.load %arg8[%c0_31, %c0_32] : memref<8x128xf32, #tpu.memory_space<vmem>>, vector<8x128xf32>
      tpu.vector_store %arg8[%c0_31, %c0_32], %39 {strides = array<i32>} : memref<8x128xf32, #tpu.memory_space<vmem>>, vector<8x128xf32>,
      %cst_33 = arith.constant 0xFF800000 : f32
      %41 = vector.broadcast %cst_33 : f32 to vector<8x1xf32>
      %c0_34 = arith.constant 0 : index
      %c0_35 = arith.constant 0 : index
      %42 = vector.load %arg9[%c0_34, %c0_35] : memref<8x1xf32, #tpu.memory_space<vmem>>, vector<8x1xf32>
      tpu.vector_store %arg9[%c0_34, %c0_35], %41 {strides = array<i32>} : memref<8x1xf32, #tpu.memory_space<vmem>>, vector<8x1xf32>,
      %cst_36 = arith.constant 0.000000e+00 : f32
      %43 = vector.broadcast %cst_36 : f32 to vector<8x1xf32>
      %c0_37 = arith.constant 0 : index
      %c0_38 = arith.constant 0 : index
      %44 = vector.load %arg10[%c0_37, %c0_38] : memref<8x1xf32, #tpu.memory_space<vmem>>, vector<8x1xf32>
      tpu.vector_store %arg10[%c0_37, %c0_38], %43 {strides = array<i32>} : memref<8x1xf32, #tpu.memory_space<vmem>>, vector<8x1xf32>,
      %cst_39 = arith.constant 0.000000e+00 : f32
      %45 = vector.broadcast %cst_39 : f32 to vector<8x128xf32>
      %c0_40 = arith.constant 0 : index
      %c0_41 = arith.constant 0 : index
      %46 = vector.load %arg11[%c0_40, %c0_41] : memref<8x128xf32, #tpu.memory_space<vmem>>, vector<8x128xf32>
      tpu.vector_store %arg11[%c0_40, %c0_41], %45 {strides = array<i32>} : memref<8x128xf32, #tpu.memory_space<vmem>>, vector<8x128xf32>,
    } else {
    }
    %c0 = arith.constant 0 : index
    %c0_1 = arith.constant 0 : index
    %c0_2 = arith.constant 0 : index
    %3 = vector.load %arg4[%c0, %c0_1, %c0_2] : memref<1x8x32xf32, #tpu.memory_space<vmem>>, vector<1x8x32xf32>
    %4 = vector.shape_cast %3 : vector<1x8x32xf32> to vector<8x32xf32>
    %c0_3 = arith.constant 0 : index
    %c0_4 = arith.constant 0 : index
    %5 = vector.load %arg6[%c0_3, %c0_4] : memref<32x256xf32, #tpu.memory_space<vmem>>, vector<32x256xf32>
    %cst = arith.constant dense<0.000000e+00> : vector<8x256xf32>
    %6 = tpu.matmul %4, %5, %cst {dimension_numbers = #tpu.dot_dimension_numbers<[1], [0], [0], [1], [0, 0, 1, 1], [], []>} : vector<8x32xf32>, vector<32x256xf32>, vector<8x256xf32> -> vector<8x256xf32>
    %7 = vector.extract_strided_slice %6 {offsets = [0, 0], sizes = [8, 128], strides = [1, 1]} : vector<8x256xf32> to vector<8x128xf32>
    %8 = vector.extract_strided_slice %6 {offsets = [0, 128], sizes = [8, 128], strides = [1, 1]} : vector<8x256xf32> to vector<8x128xf32>
    %c0_5 = arith.constant 0 : index
    %c0_6 = arith.constant 0 : index
    %9 = vector.load %arg8[%c0_5, %c0_6] : memref<8x128xf32, #tpu.memory_space<vmem>>, vector<8x128xf32>
    %cst_7 = arith.constant dense<0.000000e+00> : vector<8x8xf32>
    %10 = tpu.matmul %9, %7, %cst_7 {dimension_numbers = #tpu.dot_dimension_numbers<[1], [1], [0], [0], [0, 0, 1, 0], [], []>} : vector<8x128xf32>, vector<8x128xf32>, vector<8x8xf32> -> vector<8x8xf32>
    %c0_8 = arith.constant 0 : index
    %c0_9 = arith.constant 0 : index
    %11 = vector.load %arg9[%c0_8, %c0_9] : memref<8x1xf32, #tpu.memory_space<vmem>>, vector<8x1xf32>
    %cst_10 = arith.constant dense<0xFF800000> : vector<8xf32>
    %12 = vector.multi_reduction <maximumf>, %10, %cst_10 [1] : vector<8x8xf32> to vector<8xf32>
    %13 = vector.shape_cast %12 : vector<8xf32> to vector<8x1xf32>
    %14 = arith.maximumf %11, %13 : vector<8x1xf32>
    %15 = arith.subf %11, %14 : vector<8x1xf32>
    %16 = math.exp %15 : vector<8x1xf32>
    %17 = vector.broadcast %14 : vector<8x1xf32> to vector<8x8xf32>
    %18 = arith.subf %10, %17 : vector<8x8xf32>
    %19 = math.exp %18 : vector<8x8xf32>
    %c0_11 = arith.constant 0 : index
    %c0_12 = arith.constant 0 : index
    %20 = vector.load %arg10[%c0_11, %c0_12] : memref<8x1xf32, #tpu.memory_space<vmem>>, vector<8x1xf32>
    %21 = arith.mulf %16, %20 : vector<8x1xf32>
    %cst_13 = arith.constant dense<0.000000e+00> : vector<8xf32>
    %22 = vector.multi_reduction <add>, %19, %cst_13 [1] : vector<8x8xf32> to vector<8xf32>
    %23 = vector.shape_cast %22 : vector<8xf32> to vector<8x1xf32>
    %24 = arith.addf %21, %23 : vector<8x1xf32>
    %c0_14 = arith.constant 0 : index
    %c0_15 = arith.constant 0 : index
    %25 = vector.load %arg10[%c0_14, %c0_15] : memref<8x1xf32, #tpu.memory_space<vmem>>, vector<8x1xf32>
    tpu.vector_store %arg10[%c0_14, %c0_15], %24 {strides = array<i32>} : memref<8x1xf32, #tpu.memory_space<vmem>>, vector<8x1xf32>,
    %c0_16 = arith.constant 0 : index
    %c0_17 = arith.constant 0 : index
    %26 = vector.load %arg11[%c0_16, %c0_17] : memref<8x128xf32, #tpu.memory_space<vmem>>, vector<8x128xf32>
    %27 = vector.broadcast %16 : vector<8x1xf32> to vector<8x128xf32>
    %28 = arith.mulf %27, %26 : vector<8x128xf32>
    %cst_18 = arith.constant dense<0.000000e+00> : vector<8x128xf32>
    %29 = tpu.matmul %19, %8, %cst_18 {dimension_numbers = #tpu.dot_dimension_numbers<[1], [0], [0], [1], [0, 0, 1, 1], [], []>} : vector<8x8xf32>, vector<8x128xf32>, vector<8x128xf32> -> vector<8x128xf32>
    %30 = arith.addf %28, %29 : vector<8x128xf32>
    %c0_19 = arith.constant 0 : index
    %c0_20 = arith.constant 0 : index
    %31 = vector.load %arg11[%c0_19, %c0_20] : memref<8x128xf32, #tpu.memory_space<vmem>>, vector<8x128xf32>
    tpu.vector_store %arg11[%c0_19, %c0_20], %30 {strides = array<i32>} : memref<8x128xf32, #tpu.memory_space<vmem>>, vector<8x128xf32>,
    %c0_21 = arith.constant 0 : index
    %c0_22 = arith.constant 0 : index
    %32 = vector.load %arg9[%c0_21, %c0_22] : memref<8x1xf32, #tpu.memory_space<vmem>>, vector<8x1xf32>
    tpu.vector_store %arg9[%c0_21, %c0_22], %14 {strides = array<i32>} : memref<8x1xf32, #tpu.memory_space<vmem>>, vector<8x1xf32>,
    %c0_i32_23 = arith.constant 0 : i32
    %33 = arith.cmpi eq, %arg2, %c0_i32_23 : i32
    %34 = arith.extui %33 : i1 to i32
    %c0_i32_24 = arith.constant 0 : i32
    %35 = arith.cmpi ne, %34, %c0_i32_24 : i32
    scf.if %35 {
      %c0_25 = arith.constant 0 : index
      %c0_26 = arith.constant 0 : index
      %36 = vector.load %arg10[%c0_25, %c0_26] : memref<8x1xf32, #tpu.memory_space<vmem>>, vector<8x1xf32>
      %37 = tpu.reciprocal %36 : vector<8x1xf32> -> vector<8x1xf32>
      %c0_27 = arith.constant 0 : index
      %c0_28 = arith.constant 0 : index
      %38 = vector.load %arg11[%c0_27, %c0_28] : memref<8x128xf32, #tpu.memory_space<vmem>>, vector<8x128xf32>
      %39 = vector.broadcast %37 : vector<8x1xf32> to vector<8x128xf32>
      %40 = arith.mulf %38, %39 : vector<8x128xf32>
      %c0_29 = arith.constant 0 : index
      %c0_30 = arith.constant 0 : index
      %c0_31 = arith.constant 0 : index
      %41 = vector.load %arg7[%c0_29, %c0_30, %c0_31] : memref<1x8x128xf32, #tpu.memory_space<vmem>>, vector<1x8x128xf32>
      %42 = vector.shape_cast %41 : vector<1x8x128xf32> to vector<8x128xf32>
      %43 = vector.shape_cast %40 : vector<8x128xf32> to vector<1x8x128xf32>
      tpu.vector_store %arg7[%c0_29, %c0_30, %c0_31], %43 {strides = array<i32>} : memref<1x8x128xf32, #tpu.memory_space<vmem>>, vector<1x8x128xf32>,
    } else {
    }
    return
  }
  func.func @transform_0(%arg0: i32, %arg1: i32, %arg2: i32) -> (i32, i32, i32) {
    %c0_i32 = arith.constant 0 : i32
    %c0_i32_0 = arith.constant 0 : i32
    return %arg0, %arg1, %c0_i32 : i32, i32, i32
  }
  func.func @transform_1(%arg0: i32, %arg1: i32, %arg2: i32) -> (i32, i32, i32) {
    %c0_i32 = arith.constant 0 : i32
    %c0_i32_0 = arith.constant 0 : i32
    return %arg0, %arg2, %c0_i32 : i32, i32, i32
  }
  func.func @transform_2(%arg0: i32, %arg1: i32, %arg2: i32) -> (i32, i32) {
    %c0_i32 = arith.constant 0 : i32
    %c0_i32_0 = arith.constant 0 : i32
    %c0_i32_1 = arith.constant 0 : i32
    return %c0_i32, %c0_i32_0 : i32, i32
  }
  func.func @transform_3(%arg0: i32, %arg1: i32, %arg2: i32) -> (i32, i32) {
    %c0_i32 = arith.constant 0 : i32
    %c0_i32_0 = arith.constant 0 : i32
    %c0_i32_1 = arith.constant 0 : i32
    return %c0_i32, %c0_i32_0 : i32, i32
  }
  func.func @transform_4(%arg0: i32, %arg1: i32, %arg2: i32) -> (i32, i32, i32) {
    %c0_i32 = arith.constant 0 : i32
    %c0_i32_0 = arith.constant 0 : i32
    return %arg0, %arg1, %c0_i32 : i32, i32, i32
  }
}

</mosaic_0001>

<bundles_post_ra>
// kernel: tpu_custom_call.1
= control target key start
LH: loop header
LB: loop body
LE: loop exit
PB: predicated region body
PF: predicated region fallthrough
CT: control target
= control target key end

     0   :  { %s1537_s0 = inlined_call_operand.hbm [shape: f32[2,8,32], index: 0, kind: input, shape index: {}]   ;;  %s1538_s1 = inlined_call_operand.hbm [shape: f32[2,8,32], index: 1, kind: input, shape index: {}]   ;;  %s1539_s2 = inlined_call_operand.hbm [shape: f32[32,128], index: 2, kind: input, shape index: {}]   ;;  %s1540_s3 = inlined_call_operand.hbm [shape: f32[32,256], index: 3, kind: input, shape index: {}]   ;;  %s1541_s4 = inlined_call_operand.hbm [shape: f32[2,8,128], index: 4, kind: output, shape index: {}]  }
   0x1   :  { %1547 = sst [smem:[#allocation21_spill]] %s1539_s2 }
   0x2   :  { %1548 = sst [smem:[#allocation22_spill]] %s1540_s3 }
   0x3   :  { %9 = vsyncpa [#allocation7], 0 }
   0x4   :  { %11 = vsyncpa [#allocation7 + $0x1], 0 }
   0x5   :  { %12 = vsyncpa [#allocation10], 0 }
   0x6   :  { %14 = vsyncpa [#allocation10 + $0x1], 0 }
   0x7   :  { %15 = vsyncpa [#allocation13], 0 }
   0x8   :  { %16 = vsyncpa [#allocation8], 0 }
   0x9   :  { %18 = vsyncpa [#allocation8 + $0x1], 0  ;;  %s1234_s15 = smov 0   ;;  %s1236_s16 = smov 0  }
   0xa   :  { %s1238_s17 = smov 0   ;;  %s1240_s18 = smov 0  }
   0xb   :  { %s1242_s19 = smov 0   ;;  %s1244_s20 = smov 0  }
   0xc LB: > { %s1265_s21 = sadd.s32 4294967295, %s1193_s20   ;;  %s812_s22 = sadd.s32 4294967294, %s1193_s20   ;;  %s1193_s20 = sphi %s1244_s20, %s24_s20   ;;  %s1189_s19 = sphi %s1242_s19, %s1573_s19   ;;  %s1185_s18 = sphi %s1240_s18, %s1572_s18   ;;  %s1181_s17 = sphi %s1238_s17, %s1571_s17   ;;  %s1177_s16 = sphi %s1236_s16, %s1570_s16   ;;  %s1173_s15 = sphi %s1234_s15, %s1569_s15  }
   0xd   : > { %p65_p0 = scmp.ne.s32.totalorder %s1177_s16, %s1173_s15  ;;  %p1542_p1 = scmp.eq.s32.totalorder %s1265_s21, 0 }
   0xe   : > { %p167_p3 = scmp.eq.s32.totalorder %s812_s22, 1  ;;  %p813_p5 = scmp.ge.s32.totalorder %s1193_s20, 1 }
   0xf   : > { %p1274_p4 = por %p1542_p1, %p65_p0  ;;  %p174_p7 = scmp.lt.s32.totalorder %s1193_s20, 3 }
  0x10   : > { %p1279_p6 = por %p167_p3, %p65_p0  ;;  %s1195_s26 = smov [#allocation11]  }
  0x11   : > { %s1549_s23 = scalar_select %p1274_p4, 1, 0 }
  0x12   : > { %s1550_s24 = scalar_select %p1279_p6, 1, 0 }
  0x13   : > { %p1284_p8 = pnand %p813_p5, %p174_p7  ;;  %s186_s27 = sshll.u32 %s1195_s26, 4  ;;  %s1288_s27 = int_to_ptr.vmem [resolvable:$true] %s186_s27 }
  0x14   : > { %s1196_s29 = smov [#allocation12]   ;;  %s1553_s2 = sld [smem:[#allocation21_spill]] }
  0x15   : > { %s1551_s25 = scalar_select %p1284_p8, 1, 0 }
  0x16   : > { %p892_p9 = pneg %p1284_p8  ;;  %s199_s30 = sshll.u32 %s1196_s29, 4  ;;  %s1299_s30 = int_to_ptr.vmem [resolvable:$true] %s199_s30 }
  0x18   : > { %p1295_p11 = pnand %p892_p9, %p1542_p1 }
  0x1a   : > { %s983_s7 = scalar_lea.hbm %s1553_s2, 512  ;;  %p985_p13 = pneg %p1295_p11 }
  0x1b   : > { %p984_p12 = scmp.ne.s32.totalorder %s1553_s2, %s983_s7  ;;  %p990_p5 = scmp.lt.u32.totalorder %s983_s7, %s1553_s2 }
  0x1d   : > { %p986_p0 = pnand %p985_p13, %p984_p12 }
  0x1f   : > { %p987_p3 = pneg %p986_p0 }
  0x21   : > { %p992_p7 = pnand %p990_p5, %p987_p3 }
  0x23   : > { %995 = shalt.err (!%p992_p7)
}
  0x24   : > { %s996_s12 = scalar_lea.vmem %s1288_s27, 512  ;;  %p1004_p2 = scmp.lt.s32.totalorder %s1288_s27, %s1288_s27 }
  0x25   : > { %p997_p9 = scmp.ne.s32.totalorder %s1288_s27, %s996_s12  ;;  %p1005_p12 = scmp.lt.s32.totalorder %s996_s12, %s996_s12 }
  0x27   : > { %p999_p10 = pnand %p997_p9, %p985_p13  ;;  %p1006_p0 = por %p1005_p12, %p1004_p2 }
  0x29   : > { %p1000_p1 = pneg %p999_p10 }
  0x2b   : > { %p1007_p6 = pnand %p1006_p0, %p1000_p1 }
  0x2d   : > { %1010 = shalt.err (!%p1007_p6)
}
  0x2e   : > { %s1197_s13 = smov 128   ;;  %s1198_s14 = smov 8  }
  0x2f   : > { %895 = dma.hbm_to_vmem [thread:$0]  (!%p1295_p11), %s1553_s2, 512, %s1288_s27, [#allocation10], %s1197_s13, %s1197_s13, %s1198_s14  }
  0x30   : > { %s1554_s3 = sld [smem:[#allocation22_spill]] }
  0x36   : > { %s1011_s6 = scalar_lea.hbm %s1554_s3, 1024 }
  0x37   : > { %p1012_p2 = scmp.ne.s32.totalorder %s1554_s3, %s1011_s6  ;;  %p1018_p10 = scmp.lt.u32.totalorder %s1011_s6, %s1554_s3 }
  0x39   : > { %p1014_p1 = pnand %p1012_p2, %p985_p13 }
  0x3b   : > { %p1015_p6 = pneg %p1014_p1 }
  0x3d   : > { %p1020_p3 = pnand %p1018_p10, %p1015_p6 }
  0x3f   : > { %1023 = shalt.err (!%p1020_p3)
}
  0x40   : > { %s1024_s27 = scalar_lea.vmem %s1299_s30, 1024  ;;  %p1032_p12 = scmp.lt.s32.totalorder %s1299_s30, %s1299_s30 }
  0x41   : > { %p1025_p5 = scmp.ne.s32.totalorder %s1299_s30, %s1024_s27  ;;  %p1033_p0 = scmp.lt.s32.totalorder %s1024_s27, %s1024_s27 }
  0x43   : > { %p1027_p7 = pnand %p1025_p5, %p985_p13  ;;  %p1034_p2 = por %p1033_p0, %p1032_p12 }
  0x45   : > { %p1028_p9 = pneg %p1027_p7 }
  0x47   : > { %p1035_p1 = pnand %p1034_p2, %p1028_p9 }
  0x49   : > { %1038 = shalt.err (!%p1035_p1)
}
  0x4a   : > { %s1199_s11 = smov 256   ;;  %s1200_s12 = smov 16  }
  0x4b   : > { %898 = dma.hbm_to_vmem [thread:$0]  (!%p1295_p11), %s1554_s3, 1024, %s1299_s30, [#allocation13], %s1199_s11, %s1199_s11, %s1200_s12  }
  0x4c   : > { %s43_s22 = sadd.s32 1, %s1189_s19  ;;  %s52_s26 = sadd.s32 1, %s1181_s17 }
  0x4d   : > { %p45_p13 = scmp.ge.s32.totalorder %s43_s22, 2  ;;  %p59_p6 = scmp.ne.s32.totalorder %s1181_s17, %s1177_s16 }
  0x4e   : > { %p60_p10 = scmp.eq.s32.totalorder %s1193_s20, 0  ;;  %p912_p3 = scmp.lt.s32.totalorder %s1193_s20, 2 }
  0x4f   : > { %s1575_s22 = smov (%p45_p13, %s43_s22), 0  ;;  %p1556_p7 = scmp.eq.s32.totalorder %s1265_s21, 1 }
  0x50   : > { %1555 = sst [smem:[#allocation20_spill]] %s1575_s22  ;;  %p61_p5 = por %p60_p10, %p59_p6 }
  0x51   : > { %p1363_p9 = por %p1556_p7, %p59_p6  ;;  %s47_s28 = ssub.s32 %s1189_s19, %s1575_s22 }
  0x52   : > { %s213_s5 = sand.u32 1, %s1181_s17   ;;  %p50_p12 = scmp.eq.s32.totalorder %s47_s28, 0 }
  0x53   : > { %s1557_s29 = scalar_select %p1363_p9, 1, 0 }
  0x54   : > { %s1370_s30 = sshll.u32 %s213_s5, 3  ;;  %s818_s6 = sshll.u32 %s1189_s19, 7 }
  0x55   : > { %s1374_s7 = scalar_select %p50_p12, %s1181_s17, %s52_s26  }
  0x56   : > { %s1379_s10 = scalar_lea.hbm %s1537_s0, %s818_s6  ;;  %s217_s27 = scalar_lea.vmem [#allocation6], %s1370_s30 }
  0x57   : > { %s225_s11 = sshll.u32 %s217_s27, 4  ;;  %p1384_p11 = pnand %p912_p3, %p61_p5  ;;  %s1388_s11 = int_to_ptr.vmem [resolvable:$true] %s225_s11 }
  0x58   : > { %s1393_s26 = scalar_lea.hbm %s1538_s1, %s818_s6  ;;  %s214_s28 = scalar_lea.sflag [#allocation7], %s213_s5 }
  0x59   : > { %s1039_s8 = scalar_lea.hbm %s1379_s10, 128  ;;  %p1041_p2 = pneg %p1384_p11 }
  0x5a   : > { %p1040_p0 = scmp.ne.s32.totalorder %s1379_s10, %s1039_s8  ;;  %s1044_s2 = scalar_lea.hbm %s1537_s0, 256 }
  0x5b   : > { %p1045_p6 = scmp.lt.u32.totalorder %s1379_s10, %s1537_s0  ;;  %p1046_p10 = scmp.lt.u32.totalorder %s1044_s2, %s1039_s8 }
  0x5c   : > { %p1042_p1 = pnand %p1041_p2, %p1040_p0  ;;  %p1048_p5 = scmp.lt.u32.totalorder %s1039_s8, %s1379_s10 }
  0x5d   : > { %p1047_p3 = por %p1046_p10, %p1045_p6 }
  0x5e   : > { %p1043_p13 = pneg %p1042_p1 }
  0x5f   : > { %p1049_p7 = por %p1048_p5, %p1047_p3 }
  0x61   : > { %p1050_p12 = pnand %p1049_p7, %p1043_p13 }
  0x63   : > { %1053 = shalt.err (!%p1050_p12)
}
  0x64   : > { %s1054_s5 = scalar_lea.vmem %s1388_s11, 128  ;;  %s1201_s6 = smov [#allocation6]  }
  0x65   : > { %p1055_p0 = scmp.ne.s32.totalorder %s1388_s11, %s1054_s5  ;;  %s1059_s13 = sshll.u32 %s1201_s6, 4  ;;  %s1060_s13 = int_to_ptr.vmem [resolvable:$false] %s1059_s13 }
  0x66   : > { %s1061_s3 = scalar_lea.vmem %s1060_s13, 256  ;;  %p1062_p4 = scmp.lt.s32.totalorder %s1388_s11, %s1060_s13 }
  0x67   : > { %p1057_p1 = pnand %p1055_p0, %p1041_p2  ;;  %p1063_p6 = scmp.lt.s32.totalorder %s1061_s3, %s1054_s5 }
  0x69   : > { %p1058_p9 = pneg %p1057_p1  ;;  %p1064_p10 = por %p1063_p6, %p1062_p4 }
  0x6b   : > { %p1065_p3 = pnand %p1064_p10, %p1058_p9 }
  0x6d   : > { %1068 = shalt.err (!%p1065_p3)
}
  0x6e   : > { %902 = dma.hbm_to_vmem [thread:$0]  (!%p1384_p11), %s1379_s10, 128, %s1388_s11, %s214_s28  }
  0x6f   : > { %s232_s2 = sand.u32 1, %s1193_s20   ;;  %s236_s22 = scalar_lea.vmem [#allocation9], %s1370_s30 }
  0x70   : > { %s244_s14 = sshll.u32 %s236_s22, 4  ;;  %s233_s8 = scalar_lea.sflag [#allocation10], %s232_s2  ;;  %s245_s14 = int_to_ptr.vmem [resolvable:$true] %s244_s14 }
  0x71   : > { %s1069_s9 = scalar_lea.hbm %s1393_s26, 128  ;;  %s1074_s6 = scalar_lea.hbm %s1538_s1, 256 }
  0x72   : > { %p1070_p4 = scmp.ne.s32.totalorder %s1393_s26, %s1069_s9  ;;  %p1075_p5 = scmp.lt.u32.totalorder %s1393_s26, %s1538_s1 }
  0x73   : > { %p1076_p7 = scmp.lt.u32.totalorder %s1074_s6, %s1069_s9  ;;  %p1078_p0 = scmp.lt.u32.totalorder %s1069_s9, %s1393_s26 }
  0x74   : > { %p1072_p9 = pnand %p1070_p4, %p1041_p2 }
  0x75   : > { %p1077_p12 = por %p1076_p7, %p1075_p5 }
  0x76   : > { %p1073_p13 = pneg %p1072_p9 }
  0x77   : > { %p1079_p1 = por %p1078_p0, %p1077_p12 }
  0x79   : > { %p1080_p6 = pnand %p1079_p1, %p1073_p13 }
  0x7b   : > { %1083 = shalt.err (!%p1080_p6)
}
  0x7c   : > { %s1084_s30 = scalar_lea.vmem %s245_s14, 128  ;;  %s1202_s10 = smov [#allocation9]  }
  0x7d   : > { %p1085_p10 = scmp.ne.s32.totalorder %s245_s14, %s1084_s30  ;;  %s1089_s11 = sshll.u32 %s1202_s10, 4  ;;  %s1090_s11 = int_to_ptr.vmem [resolvable:$false] %s1089_s11 }
  0x7e   : > { %s1091_s28 = scalar_lea.vmem %s1090_s11, 256  ;;  %p1092_p9 = scmp.lt.s32.totalorder %s245_s14, %s1090_s11 }
  0x7f   : > { %p1087_p3 = pnand %p1085_p10, %p1041_p2  ;;  %p1093_p8 = scmp.lt.s32.totalorder %s1091_s28, %s1084_s30 }
  0x81   : > { %p1088_p4 = pneg %p1087_p3  ;;  %p1094_p5 = por %p1093_p8, %p1092_p9 }
  0x83   : > { %p1095_p7 = pnand %p1094_p5, %p1088_p4 }
  0x85   : > { %1098 = shalt.err (!%p1095_p7)
}
  0x86   : > { %905 = dma.hbm_to_vmem [thread:$0]  (!%p1384_p11), %s1393_s26, 128, %s245_s14, %s233_s8  }
  0x87   : > { %p1559_p13 = scmp.ne.s32.totalorder %s1551_s25, 0 }
  0x88   : > { %s1444_s2 = sand.u32 (!%p1559_p13), 1, %s1177_s16   ;;  %p1560_p8 = scmp.ne.s32.totalorder (!%p1559_p13), %s1549_s23, 0 }
  0x89   : > { %253 = sbr.rel (%p1559_p13) target bundleno = 1190 (0x4a6), region = 36  ;;  %s1447_s22 = sshll.u32 (!%p1559_p13), %s1444_s2, 3 }
  0x8a   : > { %s256_s9 = scalar_lea.sflag (!%p1559_p13), [#allocation7], %s1444_s2  ;;  %s259_s27 = scalar_lea.vmem (!%p1559_p13), [#allocation6], %s1447_s22 }
  0x90   : > { %1152 = dma.done.wait (%p1560_p8), %s256_s9, 128  }
  0x91   : > { %1154 = vsyncadd (%p1560_p8), %s256_s9, 4294967168  ;;  %s264_s25 = sand.u32 1, %s1265_s21   ;;  %s268_s26 = scalar_lea.vmem [#allocation9], %s1447_s22 }
  0x92   : > { %s265_s12 = scalar_lea.sflag [#allocation10], %s264_s25 }
  0x93   : > { %1156 = dma.done.wait (%p1560_p8), %s265_s12, 128  }
  0x94   : > { %1158 = vsyncadd (%p1560_p8), %s265_s12, 4294967168  ;;  %p1561_p11 = scmp.eq.s32.totalorder %s1265_s21, 0 }
  0x96   : > { %1160 = dma.done.wait (%p1561_p11), [#allocation10], 512   ;;  %p1562_p2 = pmov %p1561_p11 }
  0x98   : > { %1162 = vsyncadd (%p1562_p2), [#allocation10], 4294966784  ;;  %p1563_p12 = pmov %p1562_p2 }
  0x99   : > { %p1564_p0 = pmov %p1562_p2 }
  0x9a   : > { %1164 = dma.done.wait (%p1563_p12), [#allocation13], 1024  }
  0x9b   : > { %1166 = vsyncadd (%p1564_p0), [#allocation13], 4294966272  ;;  %v1203_v0 = vmov 0.0|0.0   ;;  %v1204_v1 = vmov 0.0   ;;  %vm1205_vm0 = vmmov 0   ;;  %v396_v2 = vld [vmem:[#allocation12 + $0x8] sm:$0xff] }
  0x9c   : > { %864 = vmatprep.subr.bf16.mxu0 %v1203_v0  ;;  %471 = vmatprep.mubr.f32.mxu1 %v1204_v1  ;;  %v398_v3 = vld [vmem:[#allocation12 + $0x18] sm:$0xff]  ;;  %v395_v4 = vld [vmem:[#allocation12] sm:$0xff]  ;;  %v397_v6 = vld [vmem:[#allocation12 + $0x10] sm:$0xff]  ;;  %vm315_vm1 = vcmask 261120   ;;  %vm390_vm2 = vcmask 7168   ;;  %v1206_v26 = vmov -inf  }
  0x9d   : > { %851 = vmatprep.mubr.msk.f32.mxu0 %vm1205_vm0, %v1204_v1  ;;  %v870_v5 = vpack.c.bf16 %v398_v3, %v396_v2  ;;  %v311_v7 = vld [vmem:[#allocation11] sm:$0xff]  ;;  %v312_v8 = vld [vmem:[#allocation11 + $0x8] sm:$0xff]  ;;  %v872_v9 = vpack.c.bf16 %v397_v6, %v395_v4  ;;  %v402_v12 = vld [vmem:[#allocation12 + $0x38] sm:$0xff]  ;;  %391 = vst.msk [vmem:[#allocation3] sm:$0xff] %vm390_vm2, %v1206_v26  ;;  %vm550_vm3 = vcmask 64512   ;;  %v1207_v30 = vmov 0  }
  0x9e   : > { %v865_v10 = vpack.c.bf16 %v312_v8, %v311_v7  ;;  %v400_v11 = vld [vmem:[#allocation12 + $0x28] sm:$0xff]  ;;  %v399_v13 = vld [vmem:[#allocation12 + $0x20] sm:$0xff]  ;;  %v401_v15 = vld [vmem:[#allocation12 + $0x30] sm:$0xff]  ;;  %392 = vst.msk [vmem:[#allocation4] sm:$0xff] %vm390_vm2, %v1204_v1  ;;  %975 = vset.pattern.permute.xlu0 %v1207_v30  ;;  %976 = vset.pattern.permute.xlu1 %v1207_v30  ;;  %s831_s21 = sshll.u32 %s1185_s18, 7  ;;  %s305_s23 = scalar_lea.vmem [#allocation14], %s1447_s22 }
  0x9f   : > { %871 = vmatprep.subr.bf16.mxu1 %v870_v5  ;;  %v874_v14 = vpack.c.bf16 %v402_v12, %v400_v11  ;;  %v313_v16 = vld [vmem:[#allocation11 + $0x10] sm:$0xff]  ;;  %v314_v17 = vld [vmem:[#allocation11 + $0x18] sm:$0xff]  ;;  %v876_v18 = vpack.c.bf16 %v401_v15, %v399_v13  ;;  %v310_v21 = vld [vmem:[%s259_s27] sm:$0xff]  ;;  %s685_s14 = sshll.u32 %s305_s23, 4  ;;  %s1488_s6 = scalar_lea.hbm %s1541_s4, %s831_s21  ;;  %s1490_s14 = int_to_ptr.vmem [resolvable:$true] %s685_s14 }
  0xa0   : > { %873 = vmatpush1.bf16.msra.mxu1 %v872_v9  ;;  %866 = vmatpush3.bf16.msra.mxu0 %v865_v10  ;;  %v868_v19 = vpack.c.bf16 %v314_v17, %v313_v16  ;;  %v394_v20 = vld [vmem:[%s268_s26] sm:$0xff]  ;;  %s671_s13 = scalar_lea.sflag [#allocation8], %s1444_s2  ;;  %s1099_s3 = scalar_lea.vmem %s1490_s14, 128 }
  0xa1   : > { %875 = vmatprep.subr.bf16.mxu1 %v874_v14  ;;  %867 = vmatprep.subr.bf16.mxu0 %v1203_v0  ;;  %p1100_p1 = scmp.ne.s32.totalorder %s1490_s14, %s1099_s3  ;;  %p1565_p6 = scmp.ne.s32.totalorder %s1557_s29, 0 }
  0xa2   : > { %s1208_s18 = smov [#allocation14]  }
  0xa3   : > { %p1101_p10 = pnand %p1100_p1, %p1565_p6  ;;  %s1103_s30 = sshll.u32 %s1208_s18, 4  ;;  %s1104_s30 = int_to_ptr.vmem [resolvable:$false] %s1103_s30 }
  0xa4   : > { %877 = vmatpush1.bf16.msra.mxu1 %v876_v18  ;;  %869 = vmatpush3.bf16.msra.mxu0 %v868_v19  ;;  %v549_v31 = vld [vmem:[#allocation3] sm:$0xff]  ;;  %s1105_s10 = scalar_lea.vmem %s1104_s30, 256  ;;  %p1106_p4 = scmp.lt.s32.totalorder %s1490_s14, %s1104_s30 }
  0xa5   : > { %854 = vmatprep.subr.mxu0 %v1204_v1  ;;  %859 = vmatprep.subr.mxu1 %v1204_v1  ;;  %v566_v42 = vld [vmem:[#allocation4] sm:$0xff]  ;;  %p1102_p3 = pneg %p1101_p10  ;;  %p1107_p9 = scmp.lt.s32.totalorder %s1105_s10, %s1099_s3 }
  0xa7   : > { %828 = vmatmul.mubr.msk.f32.vlgmr.msra.gmra.mrb[0].mxu1 %vm315_vm1, %v394_v20  ;;  %852 = vmatmul.mubr.msk.f32.vlgmr.msra.gmra.mrb[0].mxu0 %vm315_vm1, %v310_v21  ;;  %p1108_p5 = por %p1107_p9, %p1106_p4 }
  0xa8   : > { %856 = vmatprep.mubr.msk.f32.mxu0 %vm1205_vm0, %v1204_v1  ;;  %861 = vmatprep.mubr.msk.f32.mxu1 %vm1205_vm0, %v1204_v1 }
  0xa9   : > { %p1109_p7 = pnand %p1108_p5, %p1102_p3 }
 0x17a   : > { %v473_v22 = vpop.f32.mrb[0].mxu1  ;;  %v385_v23 = vpop.f32.mrb[0].mxu0 }
 0x17b   : > { %v475_v24 = vpop.f32.mrb[1].mxu1  ;;  %855 = vmatpush3.xpose.msra.mxu0 %v473_v22  ;;  %v853_v25 = vpop.f32.mrb[1].mxu0 }
 0x17c   : > { %860 = vmatpush3.msra.mxu1 %v475_v24 }
 0x17e   : > { %857 = vmatmul.mubr.f32.vlgmr.msra.gmra.mrb[2].mxu0 %v385_v23 }
 0x251   : > { %v545_v27 = vpop.f32.mrb[2].mxu0 }
 0x252   : > { %v858_v28 = vpop.f32.mrb[3].mxu0  ;;  %v551_v29 = vsel %vm550_vm3, %v545_v27, -inf }
 0x253   : > { %552 = vmax.xlane.f32.xlu0 %v551_v29 }
 0x2e0   : > { %v553_v32 = vpop.xlane.xlu0 %552 }
 0x2e1   : > { %v554_v33 = vmax.f32 %v549_v31, %v553_v32 }
 0x2e3   : > { %v555_v34 = vsub.f32 %v549_v31, %v554_v33  ;;  %656 = vst.msk [vmem:[#allocation3] sm:$0xff] %vm390_vm2, %v554_v33  ;;  %560 = vperm.xlu0 %975, %v554_v33  }
 0x2e5   : > { %v556_v40 = vmul.f32 1.442695, %v555_v34 }
 0x362   : > { %v561_v35 = vpop.permute.xlu0 %560 }
 0x363   : > { %v563_v36 = vsub.f32 %v545_v27, %v561_v35 }
 0x365   : > { %v564_v37 = vmul.f32 1.442695, %v563_v36 }
 0x367   : > { %977 = vpow2.f32 %v564_v37 }
 0x368   : > { %979 = vpow2.f32 %v556_v40 }
 0x371   : > { %v978_v38 = vpop.eup %977 }
 0x372   : > { %862 = vmatmul.mubr.msk.f32.vlgmr.msra.gmra.mrb[2].mxu1 %vm550_vm3, %v978_v38  ;;  %v568_v39 = vsel %vm550_vm3, %v978_v38, 0.0  ;;  %v980_v41 = vpop.eup %979 }
 0x373   : > { %569 = vadd.xlane.f32.xlu1 %v568_v39  ;;  %v567_v43 = vmul.f32 %v980_v41, %v566_v42 }
 0x384   : > { %577 = vperm.xlu1 %976, %v980_v41  }
 0x400   : > { %v570_v44 = vpop.xlane.xlu1 %569 }
 0x401   : > { %v571_v45 = vadd.f32 %v570_v44, %v567_v43 }
 0x403   : > { %573 = vst.msk [vmem:[#allocation4] sm:$0xff] %vm390_vm2, %v571_v45 }
 0x404   : > { %v578_v50 = vpop.permute.xlu1 %577 }
 0x405   : > { %v580_v51 = vmul.f32 0.0, %v578_v50 }
 0x40a   : > { %v660_v46 = vld [vmem:[#allocation4] sm:$0xff] }
 0x40b   : > { %981 = vrcp.f32 %v660_v46 }
 0x415   : > { %v982_v47 = vpop.eup %981 }
 0x416   : > { %665 = vperm.xlu1 %976, %v982_v47  }
 0x445   : > { %v650_v48 = vpop.f32.mrb[2].mxu1 }
 0x446   : > { %v863_v49 = vpop.f32.mrb[3].mxu1  ;;  %v654_v52 = vadd.f32 %v650_v48, %v580_v51 }
 0x495   : > { %v666_v53 = vpop.permute.xlu1 %665 }
 0x496   : > { %v668_v54 = vmul.f32 %v666_v53, %v654_v52 }
 0x498   : > { %669 = vst [vmem:[%s305_s23] sm:$0xff] %v668_v54 }
 0x499   : > { %1112 = shalt.err (!%p1109_p7)
}
 0x49a   : > { %s1113_s11 = scalar_lea.hbm %s1488_s6, 128  ;;  %s1117_s22 = scalar_lea.hbm %s1541_s4, 256 }
 0x49b   : > { %p1114_p13 = scmp.ne.s32.totalorder %s1488_s6, %s1113_s11  ;;  %p1118_p2 = scmp.lt.u32.totalorder %s1488_s6, %s1541_s4 }
 0x49c   : > { %p1119_p12 = scmp.lt.u32.totalorder %s1117_s22, %s1113_s11  ;;  %p1121_p1 = scmp.lt.u32.totalorder %s1113_s11, %s1488_s6 }
 0x49d   : > { %p1115_p8 = pnand %p1114_p13, %p1565_p6 }
 0x49e   : > { %p1120_p0 = por %p1119_p12, %p1118_p2 }
 0x49f   : > { %p1116_p11 = pneg %p1115_p8 }
 0x4a0   : > { %p1122_p10 = por %p1121_p1, %p1120_p0 }
 0x4a2   : > { %p1123_p3 = pnand %p1122_p10, %p1116_p11 }
 0x4a4   : > { %1126 = shalt.err (!%p1123_p3)
}
 0x4a5   : > { %890 = dma.vmem_to_hbm [thread:$0]  (%p1565_p6), %s1490_s14, 128, %s1488_s6, %s671_s13  }
 0x4a6 PF: > { %s697_s25 = sand.u32 1, %s1173_s15   ;;  %p1566_p4 = scmp.ne.s32.totalorder %s1550_s24, 0 }
 0x4a7   : > { %p1567_p9 = scmp.ge.s32.totalorder %s1193_s20, 2  ;;  %s698_s12 = scalar_lea.sflag [#allocation8], %s697_s25 }
 0x4a9   : > { %p907_p5 = pnand %p1567_p9, %p1566_p4 }
 0x4ab   : > { %1168 = dma.done.wait (!%p907_p5), %s698_s12, 128  }
 0x4ac   : > { %1170 = vsyncadd (!%p907_p5), %s698_s12, 4294967168  ;;  %s24_s20 = sadd.s32 1, %s1193_s20   ;;  %s1568_s29 = sld [smem:[#allocation20_spill]] }
 0x4ad   : > { %p21_p7 = scmp.ge.s32.totalorder %s24_s20, 4   ;;  %s1569_s15 = smov %s1177_s16 }
 0x4ae   : > { %s1570_s16 = smov %s1181_s17  ;;  %s1571_s17 = smov %s1374_s7 }
 0x4af   : > { %s1572_s18 = smov %s1189_s19  ;;  %23 = sbr.rel (!%p21_p7) target bundleno = 12 (0xc), region = 110 }
 0x4b2   : > { %s1573_s19 = smov %s1568_s29 }
 0x4b6   :  { %703 = vsyncpa [#allocation7], 1 }
 0x4b7   :  { %705 = vsyncpa [#allocation7 + $0x1], 1 }
 0x4b8   :  { %706 = vsyncpa [#allocation10], 1 }
 0x4b9   :  { %708 = vsyncpa [#allocation10 + $0x1], 1 }
 0x4ba   :  { %709 = vsyncpa [#allocation13], 1 }
 0x4bb   :  { %710 = vsyncpa [#allocation8], 1 }
 0x4bc   :  { %712 = vsyncpa [#allocation8 + $0x1], 1 }

</bundles_post_ra>
